<compile_context>
chip_gen: v7x
topology: tpu7x:2x2x1
jax: 0.10.0
libtpu: 0.0.40
codegen_flags: <defaults>
</compile_context>

<pallas_src>
import jax
import jax.numpy as jnp
from jax.experimental import pallas as pl
from jax.experimental.pallas import tpu as pltpu


def _make_dice_kernel(hw: int, needs_mask: bool):
    """Kernel factory; `hw` is the true (unpadded) number of spatial columns."""

    def kernel(x_ref, t_ref, dice_ref, num_acc, den1_acc, den2_acc):
        k = pl.program_id(1)

        @pl.when(k == 0)
        def _init():
            num_acc[...] = jnp.zeros_like(num_acc)
            den1_acc[...] = jnp.zeros_like(den1_acc)
            den2_acc[...] = jnp.zeros_like(den2_acc)

        C = x_ref.shape[1]
        R = x_ref.shape[2]           # rows of 128 lanes in this block (multiple of 8)
        G = R // 8                   # number of (8, 128) sublane groups

        def group_sum(v):
            # (1, C, R, 128) -> (C, 8, 128): pure VPU adds across the group
            # axis; the cross-lane/sublane reduce is deferred to finalize.
            out = v[0, :, 0:8, :]
            for g in range(1, G):
                out = out + v[0, :, g * 8:(g + 1) * 8, :]
            return out

        # target^2 first so its temporaries die before probs are materialized.
        t = t_ref[...].astype(jnp.float32)                   # (1, C, R, 128)
        den2_acc[...] += group_sum(t * t)

        # Softmax over the channel axis (a leading dim => elementwise VPU ops).
        x = x_ref[...].astype(jnp.float32)                   # (1, C, R, 128)
        m = jnp.max(x, axis=1, keepdims=True)                # (1, 1, R, 128)
        e = jnp.exp(x - m)                                    # EUP
        s = jnp.sum(e, axis=1, keepdims=True)                 # (1, 1, R, 128)
        inv = pl.reciprocal(s, approx=True)                   # EUP vrcp
        inv = inv * (2.0 - s * inv)                           # one Newton step
        probs = e * inv                                       # (1, C, R, 128)

        if needs_mask:
            # Zero out padded spatial columns: their softmax is nonzero and
            # would corrupt den1 (target is already zero in the pad region).
            row = jax.lax.broadcasted_iota(jnp.int32, (1, 1, R, 128), 2)
            lane = jax.lax.broadcasted_iota(jnp.int32, (1, 1, R, 128), 3)
            col = k * (R * 128) + row * 128 + lane
            probs = jnp.where(col < hw, probs, 0.0)

        num_acc[...] += group_sum(probs * t)
        den1_acc[...] += group_sum(probs * probs)

        @pl.when(k == pl.num_programs(1) - 1)
        def _finalize():
            # Single cross-lane + sublane reduce per image.
            num = jnp.sum(jnp.sum(num_acc[...], axis=2), axis=1)     # (C,)
            d1 = jnp.sum(jnp.sum(den1_acc[...], axis=2), axis=1)
            d2 = jnp.sum(jnp.sum(den2_acc[...], axis=2), axis=1)
            dice = 2.0 * num / (d1 + d2)                              # (C,)
            dice_ref[...] = dice.reshape(1, 1, C)

    return kernel


def _round_up(a: int, b: int) -> int:
    return -(-a // b) * b


def _pick_rows_per_block(rows8: int, budget_rows: int) -> int:
    """Both args are multiples of 8.  Prefer a divisor of rows8 within
    [budget/2, budget] (avoids padding); otherwise accept padding."""
    if rows8 <= budget_rows:
        return rows8
    r = budget_rows
    while r >= 8 and 2 * r >= budget_rows:
        if rows8 % r == 0:
            return r
        r -= 8
    return budget_rows


def dice_loss(x, target, *, block_f32_bytes: int = 2 * 1024 * 1024):
    """x, target: (N, C, H, W).  Returns the scalar float32 dice loss.

    `block_f32_bytes` ~ f32 working-set bytes of one input block per grid step
    (1-4 MiB is a good range); the spatial tile is derived from it.
    """
    assert x.shape == target.shape and x.ndim == 4
    N, C, H, W = x.shape
    HW = H * W

    # ---- spatial tiling: rows of 128 lanes, multiple-of-8 rows per step ----
    rows = pl.cdiv(HW, 128)
    rows8 = _round_up(rows, 8)
    budget_rows = max(8, (block_f32_bytes // (C * 128 * 4)) // 8 * 8)
    rows_per_block = _pick_rows_per_block(rows8, budget_rows)
    rows_total = _round_up(rows8, rows_per_block)
    hw_pad = rows_total * 128
    grid_k = rows_total // rows_per_block
    needs_mask = hw_pad != HW

    # ---- repack to (N, C, rows_total, 128); pad once only if needed ----
    xr = x.reshape(N, C, HW)
    tr = target.reshape(N, C, HW)
    if hw_pad != HW:
        pad = ((0, 0), (0, 0), (0, hw_pad - HW))
        xr = jnp.pad(xr, pad)
        tr = jnp.pad(tr, pad)          # zero padding => den2/num unaffected
    xr = xr.reshape(N, C, rows_total, 128)
    tr = tr.reshape(N, C, rows_total, 128)

    # ---- VMEM budget: double-buffered native blocks + f32 temporaries ----
    blk_in = C * rows_per_block * 128 * (xr.dtype.itemsize + tr.dtype.itemsize)
    blk_f32 = C * rows_per_block * 128 * 4
    vmem_est = 2 * blk_in + 8 * blk_f32 + (1 << 20)
    vmem_limit = int(min(max(vmem_est, 32 << 20), 48 << 20))  # <= v7x physical

    dice = pl.pallas_call(
        _make_dice_kernel(HW, needs_mask),
        out_shape=jax.ShapeDtypeStruct((N, 1, C), jnp.float32),
        grid=(N, grid_k),
        in_specs=[
            pl.BlockSpec((1, C, rows_per_block, 128), lambda n, k: (n, 0, k, 0)),
            pl.BlockSpec((1, C, rows_per_block, 128), lambda n, k: (n, 0, k, 0)),
        ],
        out_specs=pl.BlockSpec((1, 1, C), lambda n, k: (n, 0, 0)),
        scratch_shapes=[
            pltpu.VMEM((C, 8, 128), jnp.float32),   # num partials
            pltpu.VMEM((C, 8, 128), jnp.float32),   # den1 partials
            pltpu.VMEM((C, 8, 128), jnp.float32),   # den2 partials
        ],
        compiler_params=pltpu.CompilerParams(
            dimension_semantics=("parallel", "arbitrary"),
            vmem_limit_bytes=vmem_limit,
        ),
    )(xr, tr)

    dice = dice[:, 0, :]                               # (N, C)
    # Global-N normalization done here (tiny op) so the batch axis stays parallel.
    return -jnp.sum(dice[:, 1:]) / jnp.float32(N)


def dice_loss_ref(x, target):
    """Pure-JAX reference mirroring the PyTorch module."""
    probs = jax.nn.softmax(x.astype(jnp.float32), axis=1)
    t = target.astype(jnp.float32)
    num = jnp.sum(probs * t, axis=(2, 3))
    den1 = jnp.sum(probs * probs, axis=(2, 3))
    den2 = jnp.sum(t * t, axis=(2, 3))
    dice = 2.0 * (num / (den1 + den2))
    return -jnp.sum(dice[:, 1:]) / x.shape[0]


if __name__ == "__main__":
    key = jax.random.PRNGKey(0)
    k1, k2, k3, k4 = jax.random.split(key, 4)

    # Case 1: module-default small shapes, one-hot target.
    # Single spatial step; exercises the 256 -> 1024 column pad + iota mask.
    N, C, H, W = 2, 4, 16, 16
    x1 = jax.random.normal(k1, (N, C, H, W), dtype=jnp.float32)
    labels = jax.random.randint(k2, (N, H, W), 0, C)
    t1 = jax.nn.one_hot(labels, C, dtype=jnp.float32).transpose(0, 3, 1, 2)
    out1 = jax.block_until_ready(dice_loss(x1, t1))
    ref1 = dice_loss_ref(x1, t1)
    assert jnp.allclose(out1, ref1, rtol=1e-4, atol=1e-4), (out1, ref1)

    # Case 2: multi-step streaming + tail masking (HW=1320 -> 2 steps of 1024).
    x2 = jax.random.normal(k3, (2, 3, 33, 40), dtype=jnp.float32)
    t2 = jax.random.uniform(k4, (2, 3, 33, 40), dtype=jnp.float32)
    out2 = jax.block_until_ready(dice_loss(x2, t2, block_f32_bytes=3 * 128 * 4 * 8))
    ref2 = dice_loss_ref(x2, t2)
    assert jnp.allclose(out2, ref2, rtol=1e-4, atol=1e-4), (out2, ref2)

    # Case 3: multi-step streaming, no padding/mask, N=1 (2 steps of 1024 cols).
    x3 = jax.random.normal(k1, (1, 4, 32, 64), dtype=jnp.float32)
    t3 = jax.random.uniform(k2, (1, 4, 32, 64), dtype=jnp.float32)
    out3 = jax.block_until_ready(dice_loss(x3, t3, block_f32_bytes=4 * 128 * 4 * 8))
    ref3 = dice_loss_ref(x3, t3)
    assert jnp.allclose(out3, ref3, rtol=1e-4, atol=1e-4), (out3, ref3)

    print("KERNEL_OK")
</pallas_src>

<mosaic_0001>
module attributes {stable_mosaic.version = 11 : i64} {
  func.func @kernel(%arg0: i32, %arg1: i32, %arg2: memref<1x4x8x128xf32, #tpu.memory_space<vmem>>, %arg3: memref<1x4x8x128xf32, #tpu.memory_space<vmem>>, %arg4: memref<1x1x4xf32, #tpu.memory_space<vmem>>, %arg5: memref<4x8x128xf32, #tpu.memory_space<vmem>>, %arg6: memref<4x8x128xf32, #tpu.memory_space<vmem>>, %arg7: memref<4x8x128xf32, #tpu.memory_space<vmem>>) attributes {dimension_semantics = [#tpu.dimension_semantics<parallel>, #tpu.dimension_semantics<arbitrary>], iteration_bounds = array<i64: 2, 1>, scalar_prefetch = 0 : i64, scratch_operands = 3 : i64, tpu.core_type = #tpu.core_type<tc>, window_params = [{transform_indices = @transform_0, window_bounds = array<i64: 1, 4, 8, 128>}, {transform_indices = @transform_1, window_bounds = array<i64: 1, 4, 8, 128>}, {transform_indices = @transform_2, window_bounds = array<i64: 1, 1, 4>}]} {
    %c0_i32 = arith.constant 0 : i32
    %0 = arith.cmpi eq, %arg1, %c0_i32 : i32
    %1 = arith.extui %0 : i1 to i32
    %c0_i32_0 = arith.constant 0 : i32
    %2 = arith.cmpi ne, %1, %c0_i32_0 : i32
    scf.if %2 {
      %cst_31 = arith.constant 0.000000e+00 : f32
      %51 = vector.broadcast %cst_31 : f32 to vector<4x8x128xf32>
      %c0_32 = arith.constant 0 : index
      %c0_33 = arith.constant 0 : index
      %c0_34 = arith.constant 0 : index
      %52 = vector.load %arg5[%c0_32, %c0_33, %c0_34] : memref<4x8x128xf32, #tpu.memory_space<vmem>>, vector<4x8x128xf32>
      tpu.vector_store %arg5[%c0_32, %c0_33, %c0_34], %51 {strides = array<i32>} : memref<4x8x128xf32, #tpu.memory_space<vmem>>, vector<4x8x128xf32>,
      %cst_35 = arith.constant 0.000000e+00 : f32
      %53 = vector.broadcast %cst_35 : f32 to vector<4x8x128xf32>
      %c0_36 = arith.constant 0 : index
      %c0_37 = arith.constant 0 : index
      %c0_38 = arith.constant 0 : index
      %54 = vector.load %arg6[%c0_36, %c0_37, %c0_38] : memref<4x8x128xf32, #tpu.memory_space<vmem>>, vector<4x8x128xf32>
      tpu.vector_store %arg6[%c0_36, %c0_37, %c0_38], %53 {strides = array<i32>} : memref<4x8x128xf32, #tpu.memory_space<vmem>>, vector<4x8x128xf32>,
      %cst_39 = arith.constant 0.000000e+00 : f32
      %55 = vector.broadcast %cst_39 : f32 to vector<4x8x128xf32>
      %c0_40 = arith.constant 0 : index
      %c0_41 = arith.constant 0 : index
      %c0_42 = arith.constant 0 : index
      %56 = vector.load %arg7[%c0_40, %c0_41, %c0_42] : memref<4x8x128xf32, #tpu.memory_space<vmem>>, vector<4x8x128xf32>
      tpu.vector_store %arg7[%c0_40, %c0_41, %c0_42], %55 {strides = array<i32>} : memref<4x8x128xf32, #tpu.memory_space<vmem>>, vector<4x8x128xf32>,
    } else {
    }
    %c0 = arith.constant 0 : index
    %c0_1 = arith.constant 0 : index
    %c0_2 = arith.constant 0 : index
    %c0_3 = arith.constant 0 : index
    %3 = vector.load %arg3[%c0, %c0_1, %c0_2, %c0_3] : memref<1x4x8x128xf32, #tpu.memory_space<vmem>>, vector<1x4x8x128xf32>
    %c0_4 = arith.constant 0 : index
    %c0_5 = arith.constant 0 : index
    %c0_6 = arith.constant 0 : index
    %4 = vector.load %arg7[%c0_4, %c0_5, %c0_6] : memref<4x8x128xf32, #tpu.memory_space<vmem>>, vector<4x8x128xf32>
    %5 = arith.mulf %3, %3 : vector<1x4x8x128xf32>
    %6 = vector.shape_cast %5 : vector<1x4x8x128xf32> to vector<4x8x128xf32>
    %7 = arith.addf %4, %6 : vector<4x8x128xf32>
    %c0_7 = arith.constant 0 : index
    %c0_8 = arith.constant 0 : index
    %c0_9 = arith.constant 0 : index
    %8 = vector.load %arg7[%c0_7, %c0_8, %c0_9] : memref<4x8x128xf32, #tpu.memory_space<vmem>>, vector<4x8x128xf32>
    tpu.vector_store %arg7[%c0_7, %c0_8, %c0_9], %7 {strides = array<i32>} : memref<4x8x128xf32, #tpu.memory_space<vmem>>, vector<4x8x128xf32>,
    %c0_10 = arith.constant 0 : index
    %c0_11 = arith.constant 0 : index
    %c0_12 = arith.constant 0 : index
    %c0_13 = arith.constant 0 : index
    %9 = vector.load %arg2[%c0_10, %c0_11, %c0_12, %c0_13] : memref<1x4x8x128xf32, #tpu.memory_space<vmem>>, vector<1x4x8x128xf32>
    %cst = arith.constant dense<0xFF800000> : vector<1x8x128xf32>
    %10 = vector.multi_reduction <maximumf>, %9, %cst [1] : vector<1x4x8x128xf32> to vector<1x8x128xf32>
    %11 = vector.shape_cast %10 : vector<1x8x128xf32> to vector<1x1x8x128xf32>
    %12 = vector.broadcast %11 : vector<1x1x8x128xf32> to vector<1x4x8x128xf32>
    %13 = arith.subf %9, %12 : vector<1x4x8x128xf32>
    %14 = math.exp %13 : vector<1x4x8x128xf32>
    %cst_14 = arith.constant dense<0.000000e+00> : vector<1x8x128xf32>
    %15 = vector.multi_reduction <add>, %14, %cst_14 [1] : vector<1x4x8x128xf32> to vector<1x8x128xf32>
    %16 = vector.shape_cast %15 : vector<1x8x128xf32> to vector<1x1x8x128xf32>
    %17 = tpu.reciprocal %16 {approx = true} : vector<1x1x8x128xf32> -> vector<1x1x8x128xf32>
    %18 = arith.mulf %16, %17 : vector<1x1x8x128xf32>
    %cst_15 = arith.constant 2.000000e+00 : f32
    %19 = vector.broadcast %cst_15 : f32 to vector<1x1x8x128xf32>
    %20 = arith.subf %19, %18 : vector<1x1x8x128xf32>
    %21 = arith.mulf %17, %20 : vector<1x1x8x128xf32>
    %22 = vector.broadcast %21 : vector<1x1x8x128xf32> to vector<1x4x8x128xf32>
    %23 = arith.mulf %14, %22 : vector<1x4x8x128xf32>
    %24 = tpu.iota {dimensions = array<i32: 2>} : vector<1x1x8x128xi32>
    %25 = tpu.iota {dimensions = array<i32: 3>} : vector<1x1x8x128xi32>
    %c1024_i32 = arith.constant 1024 : i32
    %26 = arith.muli %arg1, %c1024_i32 : i32
    %c128_i32 = arith.constant 128 : i32
    %27 = vector.broadcast %c128_i32 : i32 to vector<1x1x8x128xi32>
    %28 = arith.muli %24, %27 : vector<1x1x8x128xi32>
    %29 = vector.broadcast %26 : i32 to vector<1x1x8x128xi32>
    %30 = arith.addi %29, %28 : vector<1x1x8x128xi32>
    %31 = arith.addi %30, %25 : vector<1x1x8x128xi32>
    %c256_i32 = arith.constant 256 : i32
    %32 = vector.broadcast %c256_i32 : i32 to vector<1x1x8x128xi32>
    %33 = arith.cmpi slt, %31, %32 : vector<1x1x8x128xi32>
    %cst_16 = arith.constant 0.000000e+00 : f32
    %34 = vector.shape_cast %33 : vector<1x1x8x128xi1> to vector<1x1x8x128xi1>
    %35 = vector.broadcast %34 : vector<1x1x8x128xi1> to vector<1x4x8x128xi1>
    %36 = vector.broadcast %cst_16 : f32 to vector<1x4x8x128xf32>
    %37 = arith.select %35, %23, %36 : vector<1x4x8x128xi1>, vector<1x4x8x128xf32>
    %c0_17 = arith.constant 0 : index
    %c0_18 = arith.constant 0 : index
    %c0_19 = arith.constant 0 : index
    %38 = vector.load %arg5[%c0_17, %c0_18, %c0_19] : memref<4x8x128xf32, #tpu.memory_space<vmem>>, vector<4x8x128xf32>
    %39 = arith.mulf %37, %3 : vector<1x4x8x128xf32>
    %40 = vector.shape_cast %39 : vector<1x4x8x128xf32> to vector<4x8x128xf32>
    %41 = arith.addf %38, %40 : vector<4x8x128xf32>
    %c0_20 = arith.constant 0 : index
    %c0_21 = arith.constant 0 : index
    %c0_22 = arith.constant 0 : index
    %42 = vector.load %arg5[%c0_20, %c0_21, %c0_22] : memref<4x8x128xf32, #tpu.memory_space<vmem>>, vector<4x8x128xf32>
    tpu.vector_store %arg5[%c0_20, %c0_21, %c0_22], %41 {strides = array<i32>} : memref<4x8x128xf32, #tpu.memory_space<vmem>>, vector<4x8x128xf32>,
    %c0_23 = arith.constant 0 : index
    %c0_24 = arith.constant 0 : index
    %c0_25 = arith.constant 0 : index
    %43 = vector.load %arg6[%c0_23, %c0_24, %c0_25] : memref<4x8x128xf32, #tpu.memory_space<vmem>>, vector<4x8x128xf32>
    %44 = arith.mulf %37, %37 : vector<1x4x8x128xf32>
    %45 = vector.shape_cast %44 : vector<1x4x8x128xf32> to vector<4x8x128xf32>
    %46 = arith.addf %43, %45 : vector<4x8x128xf32>
    %c0_26 = arith.constant 0 : index
    %c0_27 = arith.constant 0 : index
    %c0_28 = arith.constant 0 : index
    %47 = vector.load %arg6[%c0_26, %c0_27, %c0_28] : memref<4x8x128xf32, #tpu.memory_space<vmem>>, vector<4x8x128xf32>
    tpu.vector_store %arg6[%c0_26, %c0_27, %c0_28], %46 {strides = array<i32>} : memref<4x8x128xf32, #tpu.memory_space<vmem>>, vector<4x8x128xf32>,
    %c0_i32_29 = arith.constant 0 : i32
    %48 = arith.cmpi eq, %arg1, %c0_i32_29 : i32
    %49 = arith.extui %48 : i1 to i32
    %c0_i32_30 = arith.constant 0 : i32
    %50 = arith.cmpi ne, %49, %c0_i32_30 : i32
    scf.if %50 {
      %c0_31 = arith.constant 0 : index
      %c0_32 = arith.constant 0 : index
      %c0_33 = arith.constant 0 : index
      %51 = vector.load %arg5[%c0_31, %c0_32, %c0_33] : memref<4x8x128xf32, #tpu.memory_space<vmem>>, vector<4x8x128xf32>
      %cst_34 = arith.constant dense<0.000000e+00> : vector<4x8xf32>
      %52 = vector.multi_reduction <add>, %51, %cst_34 [2] : vector<4x8x128xf32> to vector<4x8xf32>
      %cst_35 = arith.constant dense<0.000000e+00> : vector<4xf32>
      %53 = vector.multi_reduction <add>, %52, %cst_35 [1] : vector<4x8xf32> to vector<4xf32>
      %c0_36 = arith.constant 0 : index
      %c0_37 = arith.constant 0 : index
      %c0_38 = arith.constant 0 : index
      %54 = vector.load %arg6[%c0_36, %c0_37, %c0_38] : memref<4x8x128xf32, #tpu.memory_space<vmem>>, vector<4x8x128xf32>
      %cst_39 = arith.constant dense<0.000000e+00> : vector<4x8xf32>
      %55 = vector.multi_reduction <add>, %54, %cst_39 [2] : vector<4x8x128xf32> to vector<4x8xf32>
      %cst_40 = arith.constant dense<0.000000e+00> : vector<4xf32>
      %56 = vector.multi_reduction <add>, %55, %cst_40 [1] : vector<4x8xf32> to vector<4xf32>
      %c0_41 = arith.constant 0 : index
      %c0_42 = arith.constant 0 : index
      %c0_43 = arith.constant 0 : index
      %57 = vector.load %arg7[%c0_41, %c0_42, %c0_43] : memref<4x8x128xf32, #tpu.memory_space<vmem>>, vector<4x8x128xf32>
      %cst_44 = arith.constant dense<0.000000e+00> : vector<4x8xf32>
      %58 = vector.multi_reduction <add>, %57, %cst_44 [2] : vector<4x8x128xf32> to vector<4x8xf32>
      %cst_45 = arith.constant dense<0.000000e+00> : vector<4xf32>
      %59 = vector.multi_reduction <add>, %58, %cst_45 [1] : vector<4x8xf32> to vector<4xf32>
      %cst_46 = arith.constant 2.000000e+00 : f32
      %60 = vector.broadcast %cst_46 : f32 to vector<4xf32>
      %61 = arith.mulf %60, %53 : vector<4xf32>
      %62 = arith.addf %56, %59 : vector<4xf32>
      %63 = arith.divf %61, %62 : vector<4xf32>
      %64 = vector.shape_cast %63 : vector<4xf32> to vector<1x1x4xf32>
      %c0_47 = arith.constant 0 : index
      %c0_48 = arith.constant 0 : index
      %c0_49 = arith.constant 0 : index
      %65 = vector.load %arg4[%c0_47, %c0_48, %c0_49] : memref<1x1x4xf32, #tpu.memory_space<vmem>>, vector<1x1x4xf32>
      tpu.vector_store %arg4[%c0_47, %c0_48, %c0_49], %64 {strides = array<i32>} : memref<1x1x4xf32, #tpu.memory_space<vmem>>, vector<1x1x4xf32>,
    } else {
    }
    return
  }
  func.func @transform_0(%arg0: i32, %arg1: i32) -> (i32, i32, i32, i32) {
    %c0_i32 = arith.constant 0 : i32
    %c0_i32_0 = arith.constant 0 : i32
    %c0_i32_1 = arith.constant 0 : i32
    return %arg0, %c0_i32, %arg1, %c0_i32_0 : i32, i32, i32, i32
  }
  func.func @transform_1(%arg0: i32, %arg1: i32) -> (i32, i32, i32, i32) {
    %c0_i32 = arith.constant 0 : i32
    %c0_i32_0 = arith.constant 0 : i32
    %c0_i32_1 = arith.constant 0 : i32
    return %arg0, %c0_i32, %arg1, %c0_i32_0 : i32, i32, i32, i32
  }
  func.func @transform_2(%arg0: i32, %arg1: i32) -> (i32, i32, i32) {
    %c0_i32 = arith.constant 0 : i32
    %c0_i32_0 = arith.constant 0 : i32
    %c0_i32_1 = arith.constant 0 : i32
    return %arg0, %c0_i32, %c0_i32_0 : i32, i32, i32
  }
}

</mosaic_0001>

<bundles_post_ra>
// kernel: tpu_custom_call.1
= control target key start
LH: loop header
LB: loop body
LE: loop exit
PB: predicated region body
PF: predicated region fallthrough
CT: control target
= control target key end

     0   :  { %7 = vsyncpa [#allocation6], 0  ;;  %s1117_s0 = inlined_call_operand.hbm [shape: f32[2,4,8,128], index: 0, kind: input, shape index: {}]   ;;  %s1118_s1 = inlined_call_operand.hbm [shape: f32[2,4,8,128], index: 1, kind: input, shape index: {}]   ;;  %s1119_s2 = inlined_call_operand.hbm [shape: f32[2,1,4], index: 2, kind: output, shape index: {}]  }
   0x1   :  { %9 = vsyncpa [#allocation6 + $0x1], 0 }
   0x2   :  { %10 = vsyncpa [#allocation9], 0 }
   0x3   :  { %12 = vsyncpa [#allocation9 + $0x1], 0 }
   0x4   :  { %13 = vsyncpa [#allocation7], 0 }
   0x5   :  { %15 = vsyncpa [#allocation7 + $0x1], 0  ;;  %s850_s9 = smov 0   ;;  %s852_s10 = smov 0  }
   0x6   :  { %s854_s11 = smov 0   ;;  %s856_s12 = smov 0  }
   0x7   :  { %s858_s13 = smov 0   ;;  %s860_s14 = smov 0  }
   0x8 LB: > { %s583_s15 = sadd.s32 4294967295, %s828_s14   ;;  %s584_s16 = sadd.s32 4294967294, %s828_s14   ;;  %s828_s14 = sphi %s860_s14, %s21_s14   ;;  %s824_s13 = sphi %s858_s13, %s1137_s13   ;;  %s820_s12 = sphi %s856_s12, %s1136_s12   ;;  %s816_s11 = sphi %s854_s11, %s1135_s11   ;;  %s812_s10 = sphi %s852_s10, %s1134_s10   ;;  %s808_s9 = sphi %s850_s9, %s1133_s9  }
   0x9   : > { %s33_s17 = sadd.s32 1, %s824_s13  ;;  %s42_s18 = sadd.s32 1, %s816_s11 }
   0xa   : > { %p35_p0 = scmp.ge.s32.totalorder %s33_s17, 2  ;;  %p49_p1 = scmp.ne.s32.totalorder %s816_s11, %s812_s10 }
   0xb   : > { %p50_p2 = scmp.eq.s32.totalorder %s828_s14, 0  ;;  %p55_p3 = scmp.ne.s32.totalorder %s812_s10, %s808_s9 }
   0xc   : > { %s1139_s17 = smov (%p35_p0, %s33_s17), 0  ;;  %p56_p5 = scmp.eq.s32.totalorder %s583_s15, 0 }
   0xd   : > { %p891_p4 = por %p50_p2, %p49_p1  ;;  %s37_s20 = ssub.s32 %s824_s13, %s1139_s17 }
   0xe   : > { %p107_p6 = scmp.eq.s32.totalorder %s583_s15, 1  ;;  %p40_p7 = scmp.eq.s32.totalorder %s37_s20, 0 }
   0xf   : > { %p897_p8 = por %p56_p5, %p55_p3  ;;  %p113_p10 = scmp.eq.s32.totalorder %s584_s16, 1 }
  0x10   : > { %p901_p9 = por %p107_p6, %p49_p1  ;;  %p618_p13 = scmp.lt.s32.totalorder %s828_s14, 2 }
  0x11   : > { %s1123_s21 = scalar_select %p897_p8, 1, 0 }
  0x12   : > { %s1124_s22 = scalar_select %p901_p9, 1, 0 }
  0x13   : > { %s906_s23 = scalar_select %p40_p7, %s816_s11, %s42_s18  }
  0x14   : > { %p908_p11 = por %p113_p10, %p55_p3  ;;  %s915_s25 = sand.u32 1, %s816_s11  }
  0x15   : > { %s587_s26 = sshll.u32 %s915_s25, 5  ;;  %s599_s27 = sshll.u32 %s824_s13, 9 }
  0x16   : > { %s1125_s24 = scalar_select %p908_p11, 1, 0 }
  0x17   : > { %s924_s30 = scalar_lea.hbm %s1117_s0, %s599_s27  ;;  %s137_s3 = scalar_lea.vmem [#allocation5], %s587_s26 }
  0x18   : > { %s145_s4 = sshll.u32 %s137_s3, 4  ;;  %p932_p0 = pnand %p618_p13, %p891_p4  ;;  %s928_s4 = int_to_ptr.vmem [resolvable:$true] %s145_s4 }
  0x19   : > { %s134_s6 = scalar_lea.sflag [#allocation6], %s915_s25  ;;  %s682_s7 = scalar_lea.hbm %s924_s30, 512 }
  0x1a   : > { %p683_p2 = scmp.ne.s32.totalorder %s924_s30, %s682_s7  ;;  %p684_p3 = pneg %p932_p0 }
  0x1b   : > { %s687_s16 = scalar_lea.hbm %s1117_s0, 1024  ;;  %p688_p4 = scmp.lt.u32.totalorder %s924_s30, %s1117_s0 }
  0x1c   : > { %p685_p5 = pnand %p684_p3, %p683_p2  ;;  %p689_p7 = scmp.lt.u32.totalorder %s687_s16, %s682_s7 }
  0x1d   : > { %p691_p13 = scmp.lt.u32.totalorder %s682_s7, %s924_s30 }
  0x1e   : > { %p686_p6 = pneg %p685_p5  ;;  %p690_p10 = por %p689_p7, %p688_p4 }
  0x20   : > { %p692_p12 = por %p691_p13, %p690_p10 }
  0x22   : > { %p693_p1 = pnand %p692_p12, %p686_p6 }
  0x24   : > { %696 = shalt.err (!%p693_p1)
}
  0x25   : > { %s697_s20 = scalar_lea.vmem %s928_s4, 512  ;;  %s830_s28 = smov [#allocation5]  }
  0x26   : > { %p698_p2 = scmp.ne.s32.totalorder %s928_s4, %s697_s20  ;;  %s702_s29 = sshll.u32 %s830_s28, 4  ;;  %s703_s29 = int_to_ptr.vmem [resolvable:$false] %s702_s29 }
  0x27   : > { %s704_s3 = scalar_lea.vmem %s703_s29, 1024  ;;  %p705_p9 = scmp.lt.s32.totalorder %s928_s4, %s703_s29 }
  0x28   : > { %p700_p5 = pnand %p698_p2, %p684_p3  ;;  %p706_p4 = scmp.lt.s32.totalorder %s704_s3, %s697_s20 }
  0x2a   : > { %p701_p11 = pneg %p700_p5  ;;  %p707_p7 = por %p706_p4, %p705_p9 }
  0x2c   : > { %p708_p10 = pnand %p707_p7, %p701_p11 }
  0x2e   : > { %711 = shalt.err (!%p708_p10)
}
  0x2f   : > { %s831_s7 = smov 128   ;;  %s832_s8 = smov 8  }
  0x30   : > { %610 = dma.hbm_to_vmem [thread:$0]  (!%p932_p0), %s924_s30, 512, %s928_s4, %s134_s6, %s831_s7, %s831_s7, %s832_s8  }
  0x31   : > { %p175_p9 = scmp.lt.s32.totalorder %s828_s14, 3  ;;  %s974_s18 = scalar_lea.hbm %s1118_s1, %s599_s27 }
  0x32   : > { %p1127_p11 = scmp.ge.s32.totalorder %s828_s14, 1  ;;  %s159_s20 = scalar_lea.vmem [#allocation8], %s587_s26 }
  0x33   : > { %s167_s28 = sshll.u32 %s159_s20, 4  ;;  %s156_s30 = scalar_lea.sflag [#allocation9], %s915_s25  ;;  %s984_s28 = int_to_ptr.vmem [resolvable:$true] %s167_s28 }
  0x34   : > { %p978_p12 = pnand %p1127_p11, %p175_p9  ;;  %s712_s4 = scalar_lea.hbm %s974_s18, 512 }
  0x35   : > { %p713_p1 = scmp.ne.s32.totalorder %s974_s18, %s712_s4  ;;  %s717_s29 = scalar_lea.hbm %s1118_s1, 1024 }
  0x36   : > { %p718_p2 = scmp.lt.u32.totalorder %s974_s18, %s1118_s1  ;;  %p719_p5 = scmp.lt.u32.totalorder %s717_s29, %s712_s4 }
  0x37   : > { %p715_p6 = pnand %p713_p1, %p684_p3  ;;  %p721_p7 = scmp.lt.u32.totalorder %s712_s4, %s974_s18 }
  0x38   : > { %p720_p4 = por %p719_p5, %p718_p2 }
  0x39   : > { %p716_p13 = pneg %p715_p6 }
  0x3a   : > { %p722_p10 = por %p721_p7, %p720_p4 }
  0x3c   : > { %p723_p9 = pnand %p722_p10, %p716_p13 }
  0x3e   : > { %726 = shalt.err (!%p723_p9)
}
  0x3f   : > { %s727_s26 = scalar_lea.vmem %s984_s28, 512  ;;  %s833_s16 = smov [#allocation8]  }
  0x40   : > { %p728_p11 = scmp.ne.s32.totalorder %s984_s28, %s727_s26  ;;  %s732_s20 = sshll.u32 %s833_s16, 4  ;;  %s733_s20 = int_to_ptr.vmem [resolvable:$false] %s732_s20 }
  0x41   : > { %s734_s27 = scalar_lea.vmem %s733_s20, 1024  ;;  %p735_p8 = scmp.lt.s32.totalorder %s984_s28, %s733_s20 }
  0x42   : > { %p730_p1 = pnand %p728_p11, %p684_p3  ;;  %p736_p2 = scmp.lt.s32.totalorder %s734_s27, %s727_s26 }
  0x44   : > { %p731_p6 = pneg %p730_p1  ;;  %p737_p5 = por %p736_p2, %p735_p8 }
  0x46   : > { %p738_p4 = pnand %p737_p5, %p731_p6 }
  0x48   : > { %741 = shalt.err (!%p738_p4)
}
  0x49   : > { %613 = dma.hbm_to_vmem [thread:$0]  (!%p932_p0), %s974_s18, 512, %s984_s28, %s156_s30, %s831_s7, %s831_s7, %s832_s8  }
  0x4a   : > { %179 = sbr.rel (%p978_p12) target bundleno = 466 (0x1d2), region = 28  ;;  %s1018_s4 = sand.u32 (!%p978_p12), 1, %s812_s10  }
  0x4b   : > { %s594_s6 = sshll.u32 (!%p978_p12), %s1018_s4, 5  ;;  %s182_s29 = scalar_lea.sflag (!%p978_p12), [#allocation6], %s1018_s4 }
  0x4c   : > { %s185_s5 = scalar_lea.vmem (!%p978_p12), [#allocation5], %s594_s6  ;;  %p1129_p8 = scmp.ne.s32.totalorder (!%p978_p12), %s1123_s21, 0 }
  0x51   : > { %795 = dma.done.wait (%p1129_p8), %s182_s29, 512  }
  0x52   : > { %797 = vsyncadd (%p1129_p8), %s182_s29, 4294966784  ;;  %s191_s25 = scalar_lea.sflag [#allocation9], %s1018_s4  ;;  %s194_s7 = scalar_lea.vmem [#allocation8], %s594_s6 }
  0x53   : > { %799 = dma.done.wait (%p1129_p8), %s191_s25, 512  }
  0x54   : > { %801 = vsyncadd (%p1129_p8), %s191_s25, 4294966784  ;;  %v285_v0 = vlaneseq  ;;  %v1033_v4 = vld [vmem:[%s194_s7] sm:$0xff]  ;;  %v236_v5 = vld [vmem:[%s194_s7 + $0x8] sm:$0xff]  ;;  %vm368_vm1 = vcmask 1041409   ;;  %vm370_vm2 = vcmask 1042434   ;;  %vm372_vm3 = vcmask 1043459  }
  0x55   : > { %v243_v6 = vmul.f32 %v1033_v4, %v1033_v4  ;;  %v255_v7 = vld [vmem:[%s185_s5] sm:$0xff]  ;;  %v256_v8 = vld [vmem:[%s185_s5 + $0x8] sm:$0xff]  ;;  %v257_v9 = vld [vmem:[%s185_s5 + $0x10] sm:$0xff]  ;;  %v244_v12 = vmul.f32 %v236_v5, %v236_v5  ;;  %vm375_vm4 = vcmask 60416   ;;  %s596_s21 = sshll.u32 %s820_s12, 4  ;;  %s218_s8 = scalar_lea.vmem [#allocation10], %s1018_s4 }
  0x56   : > { %v286_v1 = vshrl.u32 %v285_v0, 7  ;;  %v288_v2 = vand.u32 127, %v285_v0  ;;  %v258_v10 = vld [vmem:[%s185_s5 + $0x18] sm:$0xff]  ;;  %v259_v11 = vmax.f32 %v255_v7, %v256_v8  ;;  %v237_v13 = vld [vmem:[%s194_s7 + $0x10] sm:$0xff]  ;;  %s482_s18 = sshll.u32 %s218_s8, 4  ;;  %vm467_vm5 = vcmask 24576   ;;  %s1068_s30 = scalar_lea.hbm %s1119_s2, %s596_s21  ;;  %s1070_s18 = int_to_ptr.vmem [resolvable:$true] %s482_s18 }
  0x57   : > { %422 = vadd.xlane.f32.xlu1 %v243_v6  ;;  %v260_v14 = vmax.f32 %v257_v9, %v258_v10  ;;  %v245_v16 = vmul.f32 %v237_v13, %v237_v13  ;;  %v238_v21 = vld [vmem:[%s194_s7 + $0x18] sm:$0xff]  ;;  %s470_s3 = scalar_lea.sflag [#allocation7], %s1018_s4  ;;  %s742_s15 = scalar_lea.vmem %s1070_s18, 16 }
  0x58   : > { %v1031_v3 = vsub.s32 %v288_v2, %v286_v1  ;;  %v246_v26 = vmul.f32 %v238_v21, %v238_v21  ;;  %v290_v34 = vmul.u32 128, %v286_v1  ;;  %p743_p0 = scmp.ne.s32.totalorder %s1070_s18, %s742_s15  ;;  %p1130_p3 = scmp.ne.s32.totalorder %s1124_s22, 0 }
  0x59   : > { %v261_v15 = vmax.f32 %v259_v11, %v260_v14  ;;  %s834_s12 = smov [#allocation10]  }
  0x5a   : > { %v293_v37 = vadd.s32 %v290_v34, %v288_v2  ;;  %p744_p12 = pnand %p743_p0, %p1130_p3  ;;  %s746_s26 = sshll.u32 %s834_s12, 4  ;;  %s747_s26 = int_to_ptr.vmem [resolvable:$false] %s746_s26 }
  0x5b   : > { %424 = vadd.xlane.f32.xlu1 %v244_v12  ;;  %v262_v17 = vsub.f32 %v255_v7, %v261_v15  ;;  %v263_v18 = vsub.f32 %v256_v8, %v261_v15  ;;  %v264_v19 = vsub.f32 %v257_v9, %v261_v15  ;;  %v265_v20 = vsub.f32 %v258_v10, %v261_v15  ;;  %s748_s16 = scalar_lea.vmem %s747_s26, 32  ;;  %p749_p7 = scmp.lt.s32.totalorder %s1070_s18, %s747_s26 }
  0x5c   : > { %vm294_vm0 = vcmp.lt.s32.totalorder %v293_v37, 256  ;;  %p745_p13 = pneg %p744_p12  ;;  %p750_p10 = scmp.lt.s32.totalorder %s748_s16, %s742_s15 }
  0x5d   : > { %v266_v22 = vmul.f32 1.442695, %v262_v17  ;;  %v268_v23 = vmul.f32 1.442695, %v263_v18  ;;  %v270_v24 = vmul.f32 1.442695, %v264_v19 }
  0x5e   : > { %v272_v25 = vmul.f32 1.442695, %v265_v20  ;;  %p751_p9 = por %p750_p10, %p749_p7 }
  0x5f   : > { %426 = vadd.xlane.f32.xlu1 %v245_v16  ;;  %670 = vpow2.f32 %v266_v22 }
  0x60   : > { %672 = vpow2.f32 %v268_v23  ;;  %p752_p11 = pnand %p751_p9, %p745_p13 }
  0x61   : > { %674 = vpow2.f32 %v270_v24 }
  0x62   : > { %676 = vpow2.f32 %v272_v25 }
  0x63   : > { %428 = vadd.xlane.f32.xlu1 %v246_v26 }
  0x69   : > { %v671_v27 = vpop.eup %670 }
  0x6a   : > { %v673_v28 = vpop.eup %672 }
  0x6b   : > { %v675_v29 = vpop.eup %674  ;;  %v274_v30 = vadd.f32 %v673_v28, %v671_v27 }
  0x6c   : > { %v677_v31 = vpop.eup %676 }
  0x6d   : > { %v275_v32 = vadd.f32 %v675_v29, %v274_v30 }
  0x6f   : > { %v276_v33 = vadd.f32 %v677_v31, %v275_v32 }
  0x71   : > { %678 = vrcp.f32 %v276_v33 }
  0x7b   : > { %v679_v35 = vpop.eup %678 }
  0x7c   : > { %v278_v36 = vmul.f32 %v679_v35, %v276_v33 }
  0x7e   : > { %v279_v38 = vsub.f32 2.0, %v278_v36 }
  0x80   : > { %v280_v39 = vmul.f32 %v679_v35, %v279_v38 }
  0x82   : > { %v281_v40 = vmul.f32 %v671_v27, %v280_v39  ;;  %v282_v41 = vmul.f32 %v673_v28, %v280_v39  ;;  %v284_v42 = vmul.f32 %v677_v31, %v280_v39  ;;  %v283_v45 = vmul.f32 %v675_v29, %v280_v39 }
  0x84   : > { %v297_v43 = vsel %vm294_vm0, %v281_v40, 0.0  ;;  %v298_v44 = vsel %vm294_vm0, %v282_v41, 0.0  ;;  %v300_v49 = vsel %vm294_vm0, %v284_v42, 0.0  ;;  %v299_v50 = vsel %vm294_vm0, %v283_v45, 0.0 }
  0x85   : > { %v321_v46 = vmul.f32 %v297_v43, %v297_v43  ;;  %v306_v47 = vmul.f32 %v298_v44, %v236_v5  ;;  %v322_v48 = vmul.f32 %v298_v44, %v298_v44  ;;  %v308_v51 = vmul.f32 %v300_v49, %v238_v21 }
  0x86   : > { %v323_v52 = vmul.f32 %v299_v50, %v299_v50  ;;  %v324_v53 = vmul.f32 %v300_v49, %v300_v49  ;;  %v305_v54 = vmul.f32 %v297_v43, %v1033_v4  ;;  %v307_v55 = vmul.f32 %v299_v50, %v237_v13 }
  0x87   : > { %383 = vadd.xlane.f32.xlu0 %v321_v46  ;;  %342 = vadd.xlane.f32.xlu1 %v306_v47 }
  0x8b   : > { %385 = vadd.xlane.f32.xlu0 %v322_v48  ;;  %346 = vadd.xlane.f32.xlu1 %v308_v51 }
  0x8f   : > { %387 = vadd.xlane.f32.xlu0 %v323_v52 }
  0x93   : > { %389 = vadd.xlane.f32.xlu0 %v324_v53 }
  0x97   : > { %340 = vadd.xlane.f32.xlu0 %v305_v54 }
  0x9b   : > { %344 = vadd.xlane.f32.xlu0 %v307_v55 }
  0xe4   : > { %v423_v56 = vpop.xlane.xlu1 %422 }
  0xe5   : > { %v437_v58 = vrot.slane %v423_v56, %v1031_v3 }
  0xe8   : > { %v425_v57 = vpop.xlane.xlu1 %424 }
  0xe9   : > { %v441_v59 = vrot.slane %v425_v57, %v1031_v3 }
  0xeb   : > { %v450_v61 = vsel %vm368_vm1, %v441_v59, %v437_v58 }
  0xec   : > { %v427_v60 = vpop.xlane.xlu1 %426 }
  0xed   : > { %v445_v62 = vrot.slane %v427_v60, %v1031_v3 }
  0xef   : > { %v451_v0 = vsel %vm370_vm2, %v445_v62, %v450_v61 }
  0xf0   : > { %v429_v63 = vpop.xlane.xlu1 %428 }
  0xf1   : > { %v449_v1 = vrot.slane %v429_v63, %v1031_v3 }
  0xf3   : > { %v452_v2 = vsel %vm372_vm3, %v449_v1, %v451_v0 }
  0xf4   : > { %v454_v4 = vsel %vm375_vm4, %v452_v2, 0.0 }
  0xf5   : > { %455 = vadd.xlane.f32.xlu1 %v454_v4 }
 0x114   : > { %v384_v5 = vpop.xlane.xlu0 %383  ;;  %v343_v11 = vpop.xlane.xlu1 %342 }
 0x115   : > { %v398_v10 = vrot.slane %v384_v5, %v1031_v3  ;;  %v359_v19 = vrot.slane %v343_v11, %v1031_v3 }
 0x118   : > { %v386_v6 = vpop.xlane.xlu0 %385  ;;  %v347_v21 = vpop.xlane.xlu1 %346 }
 0x119   : > { %v402_v8 = vrot.slane %v386_v6, %v1031_v3  ;;  %v367_v24 = vrot.slane %v347_v21, %v1031_v3 }
 0x11b   : > { %v411_v13 = vsel %vm368_vm1, %v402_v8, %v398_v10 }
 0x11c   : > { %v388_v7 = vpop.xlane.xlu0 %387 }
 0x11d   : > { %v406_v9 = vrot.slane %v388_v7, %v1031_v3 }
 0x11f   : > { %v412_v15 = vsel %vm370_vm2, %v406_v9, %v411_v13 }
 0x120   : > { %v390_v12 = vpop.xlane.xlu0 %389 }
 0x121   : > { %v410_v14 = vrot.slane %v390_v12, %v1031_v3 }
 0x123   : > { %v413_v16 = vsel %vm372_vm3, %v410_v14, %v412_v15 }
 0x124   : > { %v341_v17 = vpop.xlane.xlu0 %340  ;;  %v415_v18 = vsel %vm375_vm4, %v413_v16, 0.0 }
 0x125   : > { %v355_v20 = vrot.slane %v341_v17, %v1031_v3  ;;  %416 = vadd.xlane.f32.xlu0 %v415_v18 }
 0x127   : > { %v369_v22 = vsel %vm368_vm1, %v359_v19, %v355_v20 }
 0x128   : > { %v345_v23 = vpop.xlane.xlu0 %344 }
 0x129   : > { %v363_v25 = vrot.slane %v345_v23, %v1031_v3 }
 0x12b   : > { %v371_v26 = vsel %vm370_vm2, %v363_v25, %v369_v22 }
 0x12c   : > { %v373_v27 = vsel %vm372_vm3, %v367_v24, %v371_v26 }
 0x12d   : > { %v376_v28 = vsel %vm375_vm4, %v373_v27, 0.0 }
 0x12e   : > { %377 = vadd.xlane.f32.xlu0 %v376_v28 }
 0x182   : > { %v456_v29 = vpop.xlane.xlu1 %455 }
 0x1b2   : > { %v417_v30 = vpop.xlane.xlu0 %416 }
 0x1b3   : > { %v458_v31 = vadd.f32 %v456_v29, %v417_v30 }
 0x1b5   : > { %680 = vrcp.f32 %v458_v31 }
 0x1bb   : > { %v378_v32 = vpop.xlane.xlu0 %377 }
 0x1bc   : > { %v457_v33 = vmul.f32 2.0, %v378_v32 }
 0x1bf   : > { %v681_v34 = vpop.eup %680 }
 0x1c0   : > { %v460_v35 = vmul.f32 %v681_v34, %v457_v33 }
 0x1c2   : > { %v465_v36 = vrot.slane %v460_v35, %v1031_v3 }
 0x1c4   : > { %468 = vst.msk [vmem:[%s218_s8] sm:$0x1] %vm467_vm5, %v465_v36 }
 0x1c5   : > { %755 = shalt.err (!%p752_p11)
}
 0x1c6   : > { %s756_s20 = scalar_lea.hbm %s1068_s30, 16  ;;  %s760_s6 = scalar_lea.hbm %s1119_s2, 32 }
 0x1c7   : > { %p757_p1 = scmp.ne.s32.totalorder %s1068_s30, %s756_s20  ;;  %p761_p5 = scmp.lt.u32.totalorder %s1068_s30, %s1119_s2 }
 0x1c8   : > { %p762_p4 = scmp.lt.u32.totalorder %s760_s6, %s756_s20  ;;  %p764_p0 = scmp.lt.u32.totalorder %s756_s20, %s1068_s30 }
 0x1c9   : > { %p758_p6 = pnand %p757_p1, %p1130_p3 }
 0x1ca   : > { %p763_p8 = por %p762_p4, %p761_p5 }
 0x1cb   : > { %p759_p2 = pneg %p758_p6 }
 0x1cc   : > { %p765_p12 = por %p764_p0, %p763_p8 }
 0x1ce   : > { %p766_p13 = pnand %p765_p12, %p759_p2 }
 0x1d0   : > { %769 = shalt.err (!%p766_p13)
}
 0x1d1   : > { %605 = dma.vmem_to_hbm [thread:$0]  (%p1130_p3), %s1070_s18, 16, %s1068_s30, %s470_s3  }
 0x1d2 PF: > { %s494_s25 = sand.u32 1, %s808_s9   ;;  %p1131_p7 = scmp.ne.s32.totalorder %s1125_s24, 0 }
 0x1d3   : > { %p1132_p10 = scmp.ge.s32.totalorder %s828_s14, 2  ;;  %s495_s7 = scalar_lea.sflag [#allocation7], %s494_s25 }
 0x1d5   : > { %p615_p9 = pnand %p1132_p10, %p1131_p7 }
 0x1d7   : > { %803 = dma.done.wait (!%p615_p9), %s495_s7, 16  }
 0x1d8   : > { %805 = vsyncadd (!%p615_p9), %s495_s7, 4294967280  ;;  %s21_s14 = sadd.s32 1, %s828_s14   ;;  %s1133_s9 = smov %s812_s10 }
 0x1d9   : > { %p18_p11 = scmp.ge.s32.totalorder %s21_s14, 4   ;;  %s1134_s10 = smov %s816_s11 }
 0x1da   : > { %s1135_s11 = smov %s906_s23  ;;  %s1136_s12 = smov %s824_s13 }
 0x1db   : > { %s1137_s13 = smov %s1139_s17  ;;  %20 = sbr.rel (!%p18_p11) target bundleno = 8 (0x8), region = 94 }
 0x1e2   :  { %499 = vsyncpa [#allocation6], 1 }
 0x1e3   :  { %501 = vsyncpa [#allocation6 + $0x1], 1 }
 0x1e4   :  { %502 = vsyncpa [#allocation9], 1 }
 0x1e5   :  { %504 = vsyncpa [#allocation9 + $0x1], 1 }
 0x1e6   :  { %505 = vsyncpa [#allocation7], 1 }
 0x1e7   :  { %507 = vsyncpa [#allocation7 + $0x1], 1 }

</bundles_post_ra>
